<compile_context>
chip_gen: v6e
topology: v6e:2x2x1
jax: 0.10.0
libtpu: 0.0.40
codegen_flags: <defaults>
</compile_context>

<pallas_src>
import functools

import jax
import jax.numpy as jnp
from jax import lax
from jax.experimental import pallas as pl
from jax.experimental.pallas import tpu as pltpu
import numpy as np


def _round_up(x, m):
    return ((x + m - 1) // m) * m


def _pick_tm(n_rows, cap=512):
    """Largest row tile <= cap that divides n_rows, preferring 256-multiples."""
    for quantum in (256, 128, 8):
        t = (cap // quantum) * quantum
        while t >= quantum:
            if n_rows % t == 0:
                return t
            t -= quantum
    return 8  # unreachable: n_rows is always a multiple of 8


# ---------------------------------------------------------------------------
# Kernel 1: hoisted input projection over ALL (timestep, batch) rows.
#   Gi = X_bf16 @ W_ih_cat_bf16 + b_fused   (f32 accumulation on the MXU)
# ---------------------------------------------------------------------------
def input_proj_kernel(x_ref, w_ref, b_ref, o_ref):
    o_ref[...] = (
        jnp.dot(x_ref[...], w_ref[...], preferred_element_type=jnp.float32)
        + b_ref[...]
    )


# ---------------------------------------------------------------------------
# Kernel 2: sequential GRU recurrence.  Grid = (batch tiles, time chunks);
# batch tiles are independent ("parallel"), time is the serial axis.
# Hidden state lives in the output block (constant block index along time ->
# VMEM resident accumulator).  Gate slabs are H_pad (=multiple of 128) wide.
# ---------------------------------------------------------------------------
def gru_recurrence_kernel(gi_ref, whh_ref, bhn_ref, h_ref, *,
                          h_pad, t_chunk, seq_len):
    t_blk = pl.program_id(1)

    @pl.when(t_blk == 0)
    def _():
        h_ref[...] = jnp.zeros_like(h_ref)

    Hp = h_pad
    whh = whh_ref[...]                                   # (H_pad, 3*H_pad) bf16
    tb = h_ref.shape[0]
    bhn = jnp.broadcast_to(bhn_ref[...], (tb, Hp))       # hoisted broadcast
    needs_mask = (seq_len % t_chunk) != 0                # static

    def step(i, h):
        gi = gi_ref[i]                                   # (TB, 3*H_pad) f32
        gh = jnp.dot(h.astype(jnp.bfloat16), whh,
                     preferred_element_type=jnp.float32)  # (TB, 3*H_pad) f32
        r = jax.nn.sigmoid(gi[:, :Hp] + gh[:, :Hp])
        z = jax.nn.sigmoid(gi[:, Hp:2 * Hp] + gh[:, Hp:2 * Hp])
        n = jnp.tanh(gi[:, 2 * Hp:] + r * (gh[:, 2 * Hp:] + bhn))
        h_new = (1.0 - z) * n + z * h
        if needs_mask:                                   # only traced when padded
            t = t_blk * t_chunk + i
            h_new = jnp.where(t < seq_len, h_new, h)
        return h_new

    h_ref[...] = lax.fori_loop(0, t_chunk, step, h_ref[...],
                               unroll=min(8, t_chunk))


def encoder_forward(src, params, *, t_chunk=32):
    """src: (S, B) int32 -> hidden (1, B, H).  Dropout = identity (eval)."""
    S, B = src.shape
    emb_table = params["embedding"]
    w_ih, w_hh = params["w_ih"], params["w_hh"]
    b_ih, b_hh = params["b_ih"], params["b_hh"]
    E = emb_table.shape[1]
    H = w_hh.shape[1]
    H_pad = _round_up(H, 128)          # lane-aligned gate slabs & output
    G_pad = 3 * H_pad

    # ---- fused, gate-slab-padded, bf16 weights -----------------------------
    w_ih_slab = (jnp.zeros((3, H_pad, E), jnp.float32)
                 .at[:, :H, :].set(w_ih.reshape(3, H, E)))
    w_ih_cat = w_ih_slab.reshape(G_pad, E).T.astype(jnp.bfloat16)   # (E, G_pad)
    w_hh_slab = (jnp.zeros((3, H_pad, H_pad), jnp.float32)
                 .at[:, :H, :H].set(w_hh.reshape(3, H, H)))
    w_hh_cat = w_hh_slab.reshape(G_pad, H_pad).T.astype(jnp.bfloat16)  # (H_pad, G_pad)

    b_ih_r, b_ih_z, b_ih_n = jnp.split(b_ih, 3)
    b_hh_r, b_hh_z, b_hh_n = jnp.split(b_hh, 3)
    # r/z biases are purely additive -> pre-sum & fold into the hoisted
    # projection; b_hh_n stays separate (it is scaled by r inside the cell).
    b_fused = (jnp.zeros((3, H_pad), jnp.float32)
               .at[0, :H].set(b_ih_r + b_hh_r)
               .at[1, :H].set(b_ih_z + b_hh_z)
               .at[2, :H].set(b_ih_n)).reshape(1, G_pad)
    b_hn = jnp.zeros((1, H_pad), jnp.float32).at[0, :H].set(b_hh_n)

    # ---- padding: pad the tiny int32 src (not the activations) -------------
    t_chunk = max(1, min(t_chunk, S))
    B_TILE = 128                       # per-core batch tile (v7x 2nd TC)
    B_pad = _round_up(B, 8) if B <= B_TILE else _round_up(B, B_TILE)
    TB = min(B_pad, B_TILE)
    S_pad = _round_up(S, t_chunk)
    src_p = jnp.zeros((S_pad, B_pad), src.dtype).at[:S, :B].set(src)

    # Embedding gather straight into bf16 rows for the projection matmul.
    rows = jnp.take(emb_table.astype(jnp.bfloat16), src_p.reshape(-1), axis=0)
    R = S_pad * B_pad                  # (R, E); tm divides R by construction

    # ---- Kernel 1: hoisted input projection (parallel grid) ----------------
    tm = _pick_tm(R)
    tg = G_pad if G_pad <= 1536 else H_pad   # tile G so weights fit v7x VMEM
    gi_all = pl.pallas_call(
        input_proj_kernel,
        out_shape=jax.ShapeDtypeStruct((R, G_pad), jnp.float32),
        grid_spec=pltpu.PrefetchScalarGridSpec(
            num_scalar_prefetch=0,
            grid=(R // tm, G_pad // tg),
            in_specs=[
                pl.BlockSpec((tm, E), lambda i, j: (i, 0)),
                pl.BlockSpec((E, tg), lambda i, j: (0, j)),
                pl.BlockSpec((1, tg), lambda i, j: (0, j)),
            ],
            out_specs=pl.BlockSpec((tm, tg), lambda i, j: (i, j)),
        ),
        compiler_params=pltpu.CompilerParams(
            dimension_semantics=("parallel", "parallel")),
    )(rows, w_ih_cat, b_fused)
    gi_all = gi_all.reshape(S_pad, B_pad, G_pad)

    # ---- Kernel 2: sequential recurrence ------------------------------------
    kernel = functools.partial(gru_recurrence_kernel,
                               h_pad=H_pad, t_chunk=t_chunk, seq_len=S)
    h_final = pl.pallas_call(
        kernel,
        out_shape=jax.ShapeDtypeStruct((B_pad, H_pad), jnp.float32),
        grid_spec=pltpu.PrefetchScalarGridSpec(
            num_scalar_prefetch=0,
            grid=(B_pad // TB, S_pad // t_chunk),
            in_specs=[
                pl.BlockSpec((t_chunk, TB, G_pad), lambda b, t: (t, b, 0)),
                pl.BlockSpec((H_pad, G_pad), lambda b, t: (0, 0)),
                pl.BlockSpec((1, H_pad), lambda b, t: (0, 0)),
            ],
            out_specs=pl.BlockSpec((TB, H_pad), lambda b, t: (b, 0)),
        ),
        compiler_params=pltpu.CompilerParams(
            dimension_semantics=("parallel", "arbitrary")),
    )(gi_all, w_hh_cat, b_hn)

    return h_final[:B, :H][None]       # (1, B, H), like nn.GRU's hidden output


def encoder_reference(src, params):
    """Pure-JAX f32 reference (lax.scan GRU) for validation."""
    emb = jnp.take(params["embedding"], src, axis=0)     # (S, B, E)
    H = params["w_hh"].shape[1]
    B = src.shape[1]
    w_ih, w_hh = params["w_ih"], params["w_hh"]
    b_ih, b_hh = params["b_ih"], params["b_hh"]

    def cell(h, x):
        gi = x @ w_ih.T + b_ih
        gh = h @ w_hh.T + b_hh
        i_r, i_z, i_n = jnp.split(gi, 3, axis=-1)
        h_r, h_z, h_n = jnp.split(gh, 3, axis=-1)
        r = jax.nn.sigmoid(i_r + h_r)
        z = jax.nn.sigmoid(i_z + h_z)
        n = jnp.tanh(i_n + r * h_n)
        return (1.0 - z) * n + z * h, None

    h0 = jnp.zeros((B, H), jnp.float32)
    h_final, _ = lax.scan(cell, h0, emb)
    return h_final[None]


def init_params(key, input_dim, embedding_dim, hidden_dim):
    k0, k1, k2, k3, k4 = jax.random.split(key, 5)
    bound = 1.0 / np.sqrt(hidden_dim)
    return {
        "embedding": jax.random.normal(k0, (input_dim, embedding_dim), jnp.float32),
        "w_ih": jax.random.uniform(k1, (3 * hidden_dim, embedding_dim),
                                   jnp.float32, -bound, bound),
        "w_hh": jax.random.uniform(k2, (3 * hidden_dim, hidden_dim),
                                   jnp.float32, -bound, bound),
        "b_ih": jax.random.uniform(k3, (3 * hidden_dim,), jnp.float32, -bound, bound),
        "b_hh": jax.random.uniform(k4, (3 * hidden_dim,), jnp.float32, -bound, bound),
    }


if __name__ == "__main__":
    INPUT_DIM = 50      # vocab size
    EMB_DIM = 16
    HID_DIM = 32
    SEQ_LEN = 8
    BATCH = 4

    key = jax.random.PRNGKey(0)
    pkey, skey = jax.random.split(key)
    params = init_params(pkey, INPUT_DIM, EMB_DIM, HID_DIM)

    src = jax.random.randint(skey, (SEQ_LEN, BATCH), 0, INPUT_DIM, jnp.int32)

    hidden = jax.block_until_ready(encoder_forward(src, params))
    ref = jax.block_until_ready(encoder_reference(src, params))

    assert hidden.shape == (1, BATCH, HID_DIM)
    # bf16 matmul operands -> loosen the f32 tolerance (per perf review note).
    np.testing.assert_allclose(np.asarray(hidden), np.asarray(ref),
                               rtol=2e-2, atol=2e-2)

    print("KERNEL_OK")
</pallas_src>

<mosaic_0001>
module attributes {stable_mosaic.version = 11 : i64} {
  func.func @input_proj_kernel(%arg0: i32, %arg1: i32, %arg2: memref<64x16xbf16, #tpu.memory_space<vmem>>, %arg3: memref<16x384xbf16, #tpu.memory_space<vmem>>, %arg4: memref<1x384xf32, #tpu.memory_space<vmem>>, %arg5: memref<64x384xf32, #tpu.memory_space<vmem>>) attributes {dimension_semantics = [#tpu.dimension_semantics<parallel>, #tpu.dimension_semantics<parallel>], iteration_bounds = array<i64: 1, 1>, scalar_prefetch = 0 : i64, scratch_operands = 0 : i64, tpu.core_type = #tpu.core_type<tc>, window_params = [{transform_indices = @transform_0, window_bounds = array<i64: 64, 16>}, {transform_indices = @transform_1, window_bounds = array<i64: 16, 384>}, {transform_indices = @transform_2, window_bounds = array<i64: 1, 384>}, {transform_indices = @transform_3, window_bounds = array<i64: 64, 384>}]} {
    %c0 = arith.constant 0 : index
    %c0_0 = arith.constant 0 : index
    %0 = vector.load %arg2[%c0, %c0_0] : memref<64x16xbf16, #tpu.memory_space<vmem>>, vector<64x16xbf16>
    %c0_1 = arith.constant 0 : index
    %c0_2 = arith.constant 0 : index
    %1 = vector.load %arg3[%c0_1, %c0_2] : memref<16x384xbf16, #tpu.memory_space<vmem>>, vector<16x384xbf16>
    %cst = arith.constant dense<0.000000e+00> : vector<64x384xf32>
    %2 = tpu.matmul %0, %1, %cst {dimension_numbers = #tpu.dot_dimension_numbers<[1], [0], [0], [1], [0, 0, 1, 1], [], []>} : vector<64x16xbf16>, vector<16x384xbf16>, vector<64x384xf32> -> vector<64x384xf32>
    %c0_3 = arith.constant 0 : index
    %c0_4 = arith.constant 0 : index
    %3 = vector.load %arg4[%c0_3, %c0_4] : memref<1x384xf32, #tpu.memory_space<vmem>>, vector<1x384xf32>
    %4 = vector.broadcast %3 : vector<1x384xf32> to vector<64x384xf32>
    %5 = arith.addf %2, %4 : vector<64x384xf32>
    %c0_5 = arith.constant 0 : index
    %c0_6 = arith.constant 0 : index
    %6 = vector.load %arg5[%c0_5, %c0_6] : memref<64x384xf32, #tpu.memory_space<vmem>>, vector<64x384xf32>
    tpu.vector_store %arg5[%c0_5, %c0_6], %5 {strides = array<i32>} : memref<64x384xf32, #tpu.memory_space<vmem>>, vector<64x384xf32>,
    return
  }
  func.func @transform_0(%arg0: i32, %arg1: i32) -> (i32, i32) {
    %c0_i32 = arith.constant 0 : i32
    %c0_i32_0 = arith.constant 0 : i32
    return %arg0, %c0_i32 : i32, i32
  }
  func.func @transform_1(%arg0: i32, %arg1: i32) -> (i32, i32) {
    %c0_i32 = arith.constant 0 : i32
    %c0_i32_0 = arith.constant 0 : i32
    return %c0_i32, %arg1 : i32, i32
  }
  func.func @transform_2(%arg0: i32, %arg1: i32) -> (i32, i32) {
    %c0_i32 = arith.constant 0 : i32
    %c0_i32_0 = arith.constant 0 : i32
    return %c0_i32, %arg1 : i32, i32
  }
  func.func @transform_3(%arg0: i32, %arg1: i32) -> (i32, i32) {
    %c0_i32 = arith.constant 0 : i32
    return %arg0, %arg1 : i32, i32
  }
}

</mosaic_0001>

<bundles_post_ra>
// kernel: tpu_custom_call.1
= control target key start
LH: loop header
LB: loop body
LE: loop exit
PB: predicated region body
PF: predicated region fallthrough
CT: control target
= control target key end

     0   :  { %v338_v2 = vmov 0   ;;  %vm81_vm0 = vcmask 130048   ;;  %s417_s0 = inlined_call_operand.vmem [shape: bf16[64,16], index: 0, kind: input, shape index: {}]   ;;  %s418_s1 = inlined_call_operand.vmem [shape: bf16[16,384], index: 1, kind: input, shape index: {}]   ;;  %s419_s2 = inlined_call_operand.vmem [shape: f32[1,384], index: 2, kind: input, shape index: {}]   ;;  %s420_s3 = inlined_call_operand.hbm [shape: f32[64,384], index: 3, kind: output, shape index: {}]  }
   0x1   :  { %v308_v0 = vld [vmem:[%s418_s1 + $0x4] ss:$12 sps:$4 sm:$0xff]   ;;  %v310_v1 = vld [vmem:[%s418_s1] ss:$12 sps:$4 sm:$0xff]   ;;  %126 = vmatprep.mubr.bf16.mxu0 %v338_v2  ;;  %156 = vmatprep.mubr.bf16.mxu1 %v338_v2  ;;  %v312_v4 = vld [vmem:[%s417_s0 + $0x18] sm:$0xff]  }
   0x2   :  { %108 = vmatprep.subr.bf16.mxu0 %v308_v0  ;;  %302 = vmatprep.subr.bf16.mxu1 %v308_v0  ;;  %v311_v3 = vld [vmem:[%s417_s0] sm:$0xff]   ;;  %v313_v5 = vld [vmem:[%s418_s1 + $0x8] ss:$12 sps:$4 sm:$0xff]  }
   0x3   :  { %109 = vmatpush1.bf16.msra.mxu0 %v310_v1  ;;  %303 = vmatpush1.bf16.msra.mxu1 %v310_v1 }
   0x6   :  { %279 = vmatmul.mubr.msk.bf16.vlgmr.msra.gmra.mxu0 %vm81_vm0, %v311_v3  ;;  %282 = vmatmul.mubr.msk.bf16.vlgmr.msra.gmra.mxu1 %vm81_vm0, %v312_v4 }
   0x7   :  { %8 = vsyncpa [#allocation3], 0  ;;  %292 = vmatprep.subr.bf16.mxu1 %v313_v5  ;;  %136 = vmatprep.mubr.bf16.mxu0 %v338_v2  ;;  %v314_v6 = vld [vmem:[%s417_s0 + $0x8] sm:$0xff]   ;;  %v315_v7 = vld [vmem:[%s417_s0 + $0x10] sm:$0xff]   ;;  %v30_v8 = vlaneseq  ;;  %s339_s0 = smov [#allocation2]  }
   0x8   :  { %293 = vmatpush3.bf16.msra.mxu1 %v313_v5  ;;  %294 = vmatprep.mubr.msk.bf16.mxu1 %vm81_vm0, %v311_v3  ;;  %v28_v11 = vld [vmem:[%s419_s2] sm:$0x7]  ;;  %s261_s2 = sshll.u32 %s339_s0, 4  ;;  %s262_s2 = int_to_ptr.vmem [resolvable:$true] %s261_s2 }
   0x9   :  { %v31_v9 = vshrl.u32 %v30_v8, 7  ;;  %s316_s27 = scalar_lea.vmem %s262_s2, 3072  ;;  %p321_p1 = scmp.lt.s32.totalorder %s262_s2, %s262_s2 }
   0xa   :  { %p317_p0 = scmp.ne.s32.totalorder %s262_s2, %s316_s27  ;;  %p322_p2 = scmp.lt.s32.totalorder %s316_s27, %s316_s27 }
   0xb   :  { %v32_v10 = vsub.s32 0, %v31_v9  ;;  %v36_v12 = vsub.s32 1, %v31_v9  ;;  %v40_v19 = vsub.s32 2, %v31_v9 }
   0xc   :  { %p323_p3 = por %p322_p2, %p321_p1 }
   0xd   :  { %v394_v13 = vrot.slane %v28_v11, %v32_v10  ;;  %v396_v14 = vrot.slane %v28_v11, %v36_v12  ;;  %v41_v28 = vrot.slane %v28_v11, %v40_v19 }
   0xe   :  { %280 = vmatmul.mubr.msk.bf16.gmra.mxu0 %vm81_vm0, %v314_v6  ;;  %295 = vmatmul.mubr.msk.bf16.vlgmr.msra.gmra.mxu1 %vm81_vm0, %v314_v6  ;;  %p324_p4 = pnand %p323_p3, %p317_p0 }
   0xf   :  { %146 = vmatprep.mubr.bf16.mxu0 %v338_v2  ;;  %298 = vmatprep.mubr.msk.bf16.mxu1 %vm81_vm0, %v315_v7 }
  0x16   :  { %281 = vmatmul.mubr.msk.bf16.gmra.mxu0 %vm81_vm0, %v315_v7  ;;  %299 = vmatmul.mubr.msk.bf16.gmra.mxu1 %vm81_vm0, %v312_v4 }
  0xc6   :  { %v128_v15 = vpop.f32.mrf.mxu0  ;;  %v158_v16 = vpop.f32.mrf.mxu1 }
  0xc7   :  { %v129_v17 = vadd.f32 %v128_v15, %v394_v13  ;;  %v159_v18 = vadd.f32 %v158_v16, %v394_v13 }
  0xc8   :  { %v130_v20 = vpop.f32.mrf.mxu0  ;;  %v160_v21 = vpop.f32.mrf.mxu1 }
  0xc9   :  { %232 = vst [vmem:[#allocation2] sm:$0xff] %v129_v17  ;;  %250 = vst [vmem:[#allocation2 + $0x90] sm:$0xff] %v159_v18  ;;  %v131_v22 = vadd.f32 %v130_v20, %v396_v14  ;;  %v161_v23 = vadd.f32 %v160_v21, %v396_v14 }
  0xca   :  { %v132_v24 = vpop.f32.mrf.mxu0  ;;  %v162_v25 = vpop.f32.mrf.mxu1 }
  0xcb   :  { %233 = vst [vmem:[#allocation2 + $0x8] sm:$0xff] %v131_v22  ;;  %251 = vst [vmem:[#allocation2 + $0x98] sm:$0xff] %v161_v23  ;;  %v133_v26 = vadd.f32 %v132_v24, %v394_v13  ;;  %v163_v27 = vadd.f32 %v162_v25, %v394_v13 }
  0xcc   :  { %v134_v29 = vpop.f32.mrf.mxu0  ;;  %v164_v30 = vpop.f32.mrf.mxu1 }
  0xcd   :  { %235 = vst [vmem:[#allocation2 + $0x18] sm:$0xff] %v133_v26  ;;  %253 = vst [vmem:[#allocation2 + $0xa8] sm:$0xff] %v163_v27  ;;  %v135_v31 = vadd.f32 %v134_v29, %v396_v14  ;;  %v165_v32 = vadd.f32 %v164_v30, %v396_v14 }
  0xce   :  { %v138_v33 = vpop.f32.mrf.mxu0  ;;  %v296_v34 = vpop.f32.mrf.mxu1 }
  0xcf   :  { %236 = vst [vmem:[#allocation2 + $0x20] sm:$0xff] %v135_v31  ;;  %254 = vst [vmem:[#allocation2 + $0xb0] sm:$0xff] %v165_v32  ;;  %v139_v35 = vadd.f32 %v138_v33, %v394_v13  ;;  %v210_v36 = vadd.f32 %v296_v34, %v41_v28 }
  0xd0   :  { %v140_v37 = vpop.f32.mrf.mxu0  ;;  %v201_v38 = vpop.f32.mrf.mxu1 }
  0xd1   :  { %238 = vst [vmem:[#allocation2 + $0x30] sm:$0xff] %v139_v35  ;;  %240 = vst [vmem:[#allocation2 + $0x40] sm:$0xff] %v210_v36  ;;  %v141_v39 = vadd.f32 %v140_v37, %v396_v14  ;;  %v202_v40 = vadd.f32 %v201_v38, %v41_v28 }
  0xd2   :  { %v142_v41 = vpop.f32.mrf.mxu0  ;;  %v297_v42 = vpop.f32.mrf.mxu1 }
  0xd3   :  { %239 = vst [vmem:[#allocation2 + $0x38] sm:$0xff] %v141_v39  ;;  %234 = vst [vmem:[#allocation2 + $0x10] sm:$0xff] %v202_v40  ;;  %v143_v43 = vadd.f32 %v142_v41, %v394_v13  ;;  %v213_v44 = vadd.f32 %v297_v42, %v41_v28 }
  0xd4   :  { %v144_v45 = vpop.f32.mrf.mxu0  ;;  %v204_v46 = vpop.f32.mrf.mxu1 }
  0xd5   :  { %241 = vst [vmem:[#allocation2 + $0x48] sm:$0xff] %v143_v43  ;;  %243 = vst [vmem:[#allocation2 + $0x58] sm:$0xff] %v213_v44  ;;  %v145_v47 = vadd.f32 %v144_v45, %v396_v14  ;;  %v205_v48 = vadd.f32 %v204_v46, %v41_v28 }
  0xd6   :  { %v148_v49 = vpop.f32.mrf.mxu0  ;;  %v300_v50 = vpop.f32.mrf.mxu1 }
  0xd7   :  { %242 = vst [vmem:[#allocation2 + $0x50] sm:$0xff] %v145_v47  ;;  %237 = vst [vmem:[#allocation2 + $0x28] sm:$0xff] %v205_v48  ;;  %v149_v51 = vadd.f32 %v148_v49, %v394_v13  ;;  %v226_v52 = vadd.f32 %v300_v50, %v41_v28 }
  0xd8   :  { %v150_v53 = vpop.f32.mrf.mxu0  ;;  %v217_v54 = vpop.f32.mrf.mxu1 }
  0xd9   :  { %244 = vst [vmem:[#allocation2 + $0x60] sm:$0xff] %v149_v51  ;;  %252 = vst [vmem:[#allocation2 + $0xa0] sm:$0xff] %v226_v52  ;;  %v151_v55 = vadd.f32 %v150_v53, %v396_v14  ;;  %v218_v56 = vadd.f32 %v217_v54, %v41_v28 }
  0xda   :  { %v152_v57 = vpop.f32.mrf.mxu0  ;;  %v301_v58 = vpop.f32.mrf.mxu1 }
  0xdb   :  { %245 = vst [vmem:[#allocation2 + $0x68] sm:$0xff] %v151_v55  ;;  %246 = vst [vmem:[#allocation2 + $0x70] sm:$0xff] %v218_v56  ;;  %v153_v59 = vadd.f32 %v152_v57, %v394_v13  ;;  %v229_v60 = vadd.f32 %v301_v58, %v41_v28 }
  0xdc   :  { %v154_v61 = vpop.f32.mrf.mxu0  ;;  %v220_v62 = vpop.f32.mrf.mxu1 }
  0xdd   :  { %247 = vst [vmem:[#allocation2 + $0x78] sm:$0xff] %v153_v59  ;;  %255 = vst [vmem:[#allocation2 + $0xb8] sm:$0xff] %v229_v60  ;;  %v155_v63 = vadd.f32 %v154_v61, %v396_v14  ;;  %v221_v0 = vadd.f32 %v220_v62, %v41_v28 }
  0xdf   :  { %248 = vst [vmem:[#allocation2 + $0x80] sm:$0xff] %v155_v63  ;;  %249 = vst [vmem:[#allocation2 + $0x88] sm:$0xff] %v221_v0 }
  0xe0   :  { %327 = shalt.err (!%p324_p4)
}
  0xe1   :  { %s340_s28 = smov 384   ;;  %s341_s29 = smov 24  }
  0xe2   :  { %267 = dma.vmem_to_hbm [thread:$0]  %s262_s2, 3072, %s420_s3, [#allocation3], %s340_s28, %s340_s28, %s341_s29  }
  0xe3   :  { %336 = dma.done.wait [#allocation3], 3072  }
  0xe4   :  { %337 = vsyncadd [#allocation3], 4294964224 }
  0xe5   :  { %271 = vsyncpa [#allocation3], 1 }

</bundles_post_ra>
